<compile_context>
chip_gen: v5e
topology: v5e:2x2
jax: 0.10.0
libtpu: 0.0.40
codegen_flags: <defaults>
</compile_context>

<pallas_src>
import functools

import jax
import jax.numpy as jnp
from jax.experimental import pallas as pl
from jax.experimental.pallas import tpu as pltpu

D_MODEL = 256
MAX_LEN = 8
DROPOUT_P = 0.3


# ----------------------------------------------------------------------------
# Kernels
# ----------------------------------------------------------------------------
def _pe_add_kernel(x_ref, pe_ref, o_ref):
    # Eval mode: dropout is identity, hot path is just the broadcast add.
    # x block: (tb, L, D), pe block: (1, L, D) -> broadcast over leading axis.
    o_ref[...] = x_ref[...] + pe_ref[...]


def _pe_add_dropout_kernel(x_ref, pe_ref, u_ref, o_ref, *, p):
    # Train mode: inverted dropout fused with the add.
    y = x_ref[...] + pe_ref[...]
    keep = u_ref[...] >= jnp.float32(p)                 # P(keep) = 1 - p
    scale = jnp.float32(1.0 / (1.0 - p))
    o_ref[...] = y * jnp.where(keep, scale, jnp.float32(0.0))


# ----------------------------------------------------------------------------
# Wrapper
# ----------------------------------------------------------------------------
def _batch_tile(B, L, D, itemsize, target_block_bytes=4 << 20):
    """Biggest batch-tile whose x-block stays ~<= 4 MiB (safe on v7x's 64 MiB VMEM,
    double-buffered x/pe/u/out still << default scoped limit)."""
    rows = max(1, target_block_bytes // max(1, L * D * itemsize))
    return max(1, min(B, rows))


def learnable_pe(x: jax.Array,
                 pe: jax.Array,
                 *,
                 p: float = DROPOUT_P,
                 training: bool = False,
                 key: jax.Array | None = None) -> jax.Array:
    """x: (B, L, D) float32, pe: (1, L, D) float32 (learnable parameter)."""
    B, L, D = x.shape
    assert pe.shape == (1, L, D), f"pe shape {pe.shape} incompatible with x {x.shape}"

    tb = _batch_tile(B, L, D, x.dtype.itemsize)
    grid = (pl.cdiv(B, tb),)                      # == (1,) for small problems

    x_spec = pl.BlockSpec((tb, L, D), lambda b: (b, 0, 0))
    pe_spec = pl.BlockSpec((1, L, D), lambda b: (0, 0, 0))   # same block every step
    out_spec = pl.BlockSpec((tb, L, D), lambda b: (b, 0, 0))
    cparams = pltpu.CompilerParams(dimension_semantics=("parallel",))

    if (not training) or p == 0.0:
        return pl.pallas_call(
            _pe_add_kernel,
            out_shape=jax.ShapeDtypeStruct((B, L, D), x.dtype),
            grid=grid,
            in_specs=[x_spec, pe_spec],
            out_specs=out_spec,
            compiler_params=cparams,
        )(x, pe)

    # Training path: uniform randoms generated outside, mask applied inside.
    if key is None:
        key = jax.random.PRNGKey(0)
    u = jax.random.uniform(key, (B, L, D), dtype=jnp.float32)
    kernel = functools.partial(_pe_add_dropout_kernel, p=p)
    u_spec = pl.BlockSpec((tb, L, D), lambda b: (b, 0, 0))
    return pl.pallas_call(
        kernel,
        out_shape=jax.ShapeDtypeStruct((B, L, D), x.dtype),
        grid=grid,
        in_specs=[x_spec, pe_spec, u_spec],
        out_specs=out_spec,
        compiler_params=cparams,
    )(x, pe, u)


# ----------------------------------------------------------------------------
# Main
# ----------------------------------------------------------------------------
if __name__ == "__main__":
    B, L, D = 2, MAX_LEN, D_MODEL  # (2, 8, 256)

    key = jax.random.PRNGKey(0)
    kx, kpe, kdrop = jax.random.split(key, 3)
    x = jax.random.normal(kx, (B, L, D), dtype=jnp.float32)
    # The PyTorch module initializes pe to zeros; use small random values here so
    # the broadcast-add check is non-trivial (pe would be learned in practice).
    pe = 0.02 * jax.random.normal(kpe, (1, L, D), dtype=jnp.float32)

    # Eval-mode forward (dropout == identity): exact check against reference.
    y = jax.block_until_ready(learnable_pe(x, pe, training=False))
    y_ref = x + pe
    assert y.shape == (B, L, D)
    assert jnp.allclose(y, y_ref, atol=1e-6, rtol=1e-6), "eval-mode mismatch vs reference"

    # Train-mode forward (fused add + inverted dropout): check against the same
    # uniform draw reproduced outside the kernel.
    y_tr = jax.block_until_ready(learnable_pe(x, pe, training=True, key=kdrop))
    u = jax.random.uniform(kdrop, (B, L, D), dtype=jnp.float32)
    mask = jnp.where(u >= DROPOUT_P, jnp.float32(1.0 / (1.0 - DROPOUT_P)), jnp.float32(0.0))
    y_tr_ref = (x + pe) * mask
    assert y_tr.shape == (B, L, D)
    assert jnp.allclose(y_tr, y_tr_ref, atol=1e-6, rtol=1e-6), "train-mode mismatch vs reference"

    print("KERNEL_OK")
</pallas_src>

<mosaic_0001>
module attributes {stable_mosaic.version = 11 : i64} {
  func.func @_pe_add_kernel(%arg0: i32, %arg1: memref<2x8x256xf32, #tpu.memory_space<vmem>>, %arg2: memref<1x8x256xf32, #tpu.memory_space<vmem>>, %arg3: memref<2x8x256xf32, #tpu.memory_space<vmem>>) attributes {dimension_semantics = [#tpu.dimension_semantics<parallel>], iteration_bounds = array<i64: 1>, scalar_prefetch = 0 : i64, scratch_operands = 0 : i64, tpu.core_type = #tpu.core_type<tc>, window_params = [{transform_indices = @transform_0, window_bounds = array<i64: 2, 8, 256>}, {pipeline_mode = #tpu.pipeline_mode<synchronous>, transform_indices = @transform_1, window_bounds = array<i64: 1, 8, 256>}, {transform_indices = @transform_2, window_bounds = array<i64: 2, 8, 256>}]} {
    %c0 = arith.constant 0 : index
    %c0_0 = arith.constant 0 : index
    %c0_1 = arith.constant 0 : index
    %0 = vector.load %arg1[%c0, %c0_0, %c0_1] : memref<2x8x256xf32, #tpu.memory_space<vmem>>, vector<2x8x256xf32>
    %c0_2 = arith.constant 0 : index
    %c0_3 = arith.constant 0 : index
    %c0_4 = arith.constant 0 : index
    %1 = vector.load %arg2[%c0_2, %c0_3, %c0_4] : memref<1x8x256xf32, #tpu.memory_space<vmem>>, vector<1x8x256xf32>
    %2 = vector.broadcast %1 : vector<1x8x256xf32> to vector<2x8x256xf32>
    %3 = arith.addf %0, %2 : vector<2x8x256xf32>
    %c0_5 = arith.constant 0 : index
    %c0_6 = arith.constant 0 : index
    %c0_7 = arith.constant 0 : index
    %4 = vector.load %arg3[%c0_5, %c0_6, %c0_7] : memref<2x8x256xf32, #tpu.memory_space<vmem>>, vector<2x8x256xf32>
    tpu.vector_store %arg3[%c0_5, %c0_6, %c0_7], %3 {strides = array<i32>} : memref<2x8x256xf32, #tpu.memory_space<vmem>>, vector<2x8x256xf32>,
    return
  }
  func.func @transform_0(%arg0: i32) -> (i32, i32, i32) {
    %c0_i32 = arith.constant 0 : i32
    %c0_i32_0 = arith.constant 0 : i32
    %c0_i32_1 = arith.constant 0 : i32
    return %arg0, %c0_i32, %c0_i32_0 : i32, i32, i32
  }
  func.func @transform_1(%arg0: i32) -> (i32, i32, i32) {
    %c0_i32 = arith.constant 0 : i32
    %c0_i32_0 = arith.constant 0 : i32
    %c0_i32_1 = arith.constant 0 : i32
    %c0_i32_2 = arith.constant 0 : i32
    return %c0_i32, %c0_i32_0, %c0_i32_1 : i32, i32, i32
  }
  func.func @transform_2(%arg0: i32) -> (i32, i32, i32) {
    %c0_i32 = arith.constant 0 : i32
    %c0_i32_0 = arith.constant 0 : i32
    %c0_i32_1 = arith.constant 0 : i32
    return %arg0, %c0_i32, %c0_i32_0 : i32, i32, i32
  }
}

</mosaic_0001>

<bundles_post_ra>
// kernel: tpu_custom_call.1
= control target key start
LH: loop header
LB: loop body
LE: loop exit
PB: predicated region body
PF: predicated region fallthrough
CT: control target
= control target key end

     0   :  { %7 = vsyncpa [#allocation3], 0  ;;  %s194_s0 = inlined_call_operand.hbm [shape: f32[2,8,256], index: 0, kind: input, shape index: {}]   ;;  %s195_s1 = inlined_call_operand.hbm [shape: f32[1,8,256], index: 1, kind: input, shape index: {}]   ;;  %s196_s2 = inlined_call_operand.hbm [shape: f32[2,8,256], index: 2, kind: output, shape index: {}]  }
   0x1   :  { %8 = vsyncpa [#allocation6], 0 }
   0x2   :  { %9 = vsyncpa [#allocation4], 0  ;;  %s14_s11 = sshll.u32 %s194_s0, 4  ;;  %s159_s12 = smov [#allocation2]   ;;  %s15_s11 = int_to_ptr.hbm [resolvable:$true] %s14_s11 }
   0x3   :  { %s16_s13 = sshll.u32 %s159_s12, 4  ;;  %s28_s16 = sshll.u32 %s195_s1, 4  ;;  %s17_s13 = int_to_ptr.vmem [resolvable:$true] %s16_s13  ;;  %s29_s16 = int_to_ptr.hbm [resolvable:$true] %s28_s16 }
   0x4   :  { %s160_s17 = smov 256   ;;  %s161_s18 = smov 16  }
   0x5   :  { %22 = dma.hbm_to_vmem [thread:$0]  %s15_s11, 512, %s17_s13, [#allocation3], %s160_s17, %s160_s17, %s161_s18  }
   0x6   :  { %s162_s19 = smov [#allocation5]  }
   0x7   :  { %s30_s20 = sshll.u32 %s162_s19, 4  ;;  %s31_s20 = int_to_ptr.vmem [resolvable:$true] %s30_s20 }
   0x8   :  { %33 = dma.hbm_to_vmem [thread:$0]  %s29_s16, 256, %s31_s20, [#allocation6]  }
   0x9   :  { %153 = dma.done.wait [#allocation3], 512  }
   0xa   :  { %154 = vsyncadd [#allocation3], 4294966784 }
   0xb   :  { %155 = dma.done.wait [#allocation6], 256  }
   0xc   :  { %156 = vsyncadd [#allocation6], 4294967040  ;;  %v42_v0 = vld [vmem:[#allocation2] sm:$0xff]  ;;  %v43_v2 = vld [vmem:[#allocation2 + $0x8] sm:$0xff]  ;;  %s163_s0 = smov [#allocation7]   ;;  %s62_s23 = sshll.u32 %s196_s2, 4  ;;  %s63_s23 = int_to_ptr.hbm [resolvable:$true] %s62_s23 }
   0xd   :  { %v46_v1 = vld [vmem:[#allocation5] sm:$0xff]  ;;  %v47_v4 = vld [vmem:[#allocation5 + $0x8] sm:$0xff]  ;;  %v44_v5 = vld [vmem:[#allocation2 + $0x10] sm:$0xff]  ;;  %s60_s1 = sshll.u32 %s163_s0, 4  ;;  %s61_s1 = int_to_ptr.vmem [resolvable:$true] %s60_s1 }
   0xe   :  { %v48_v3 = vadd.f32 %v46_v1, %v42_v0  ;;  %v45_v6 = vld [vmem:[#allocation2 + $0x18] sm:$0xff]  ;;  %v49_v7 = vadd.f32 %v47_v4, %v43_v2  ;;  %v50_v8 = vadd.f32 %v46_v1, %v44_v5 }
   0xf   :  { %v51_v9 = vadd.f32 %v47_v4, %v45_v6 }
  0x10   :  { %52 = vst [vmem:[#allocation7] sm:$0xff] %v48_v3 }
  0x11   :  { %53 = vst [vmem:[#allocation7 + $0x8] sm:$0xff] %v49_v7 }
  0x12   :  { %54 = vst [vmem:[#allocation7 + $0x10] sm:$0xff] %v50_v8 }
  0x13   :  { %55 = vst [vmem:[#allocation7 + $0x18] sm:$0xff] %v51_v9 }
  0x14   :  { %68 = dma.vmem_to_hbm [thread:$0]  %s61_s1, 512, %s63_s23, [#allocation4], %s160_s17, %s160_s17, %s161_s18  }
  0x15   :  { %157 = dma.done.wait [#allocation4], 512  }
  0x16   :  { %158 = vsyncadd [#allocation4], 4294966784 }
  0x17   :  { %73 = vsyncpa [#allocation3], 1 }
  0x18   :  { %74 = vsyncpa [#allocation6], 1 }
  0x19   :  { %75 = vsyncpa [#allocation4], 1 }

</bundles_post_ra>
